<compile_context>
chip_gen: v5e
topology: v5e:2x2
jax: 0.10.0
libtpu: 0.0.40
codegen_flags: <defaults>
</compile_context>

<pallas_src>
import functools

import jax
import jax.numpy as jnp
from jax.experimental import pallas as pl
from jax.experimental.pallas import tpu as pltpu


def _round_up(x, m):
    return (x + m - 1) // m * m


def _linear_block_kernel(seed_ref, x_ref, w_ref, b_ref, gamma_ref, beta_ref,
                         o_ref, *acc_scratch, p, eps, training, tile_n):
    """One (feature-tile j, reduction-tile k) grid step.

    x_ref: (N, tk)  w_ref: (tk, tn)  b/gamma/beta: (1, tn)  o_ref: (N, tn).
    When the output dtype is f32, o_ref itself is the accumulator (its block
    index is constant across k); otherwise a single f32 VMEM scratch is used.
    """
    # Hoisted: program_id / num_programs / SMEM reads must NOT appear inside
    # pl.when bodies (no interpret/cond lowering for program_id) -- compile fix.
    j = pl.program_id(0)
    k = pl.program_id(1)
    nk = pl.num_programs(1)
    seed = seed_ref[0]

    acc_ref = acc_scratch[0] if acc_scratch else o_ref

    @pl.when(k == 0)
    def _init():
        acc_ref[...] = jnp.zeros_like(acc_ref)

    # (N, tk) x (tk, tn) on the MXU, f32 accumulation.  Weight was transposed
    # once in the wrapper, so the contraction is (1,)x(0,) -- no XLU transpose.
    acc_ref[...] += jax.lax.dot_general(
        x_ref[...], w_ref[...],
        dimension_numbers=(((1,), (0,)), ((), ())),
        preferred_element_type=jnp.float32)

    @pl.when(k == nk - 1)
    def _finalize():
        h = acc_ref[...] + b_ref[...]          # bias, (N, tn) + (1, tn)
        h = jnp.maximum(h, 0.0)                # ReLU

        if training and p > 0.0:
            # Stateless uint32 hash keyed on (row, GLOBAL col, seed): logical
            # shifts, 2 mixing rounds, 24-bit integer threshold compare ->
            # keep probability exactly (1 - p).
            rows = jax.lax.broadcasted_iota(jnp.uint32, h.shape, 0)
            cols = (jax.lax.broadcasted_iota(jnp.uint32, h.shape, 1)
                    + (j * tile_n).astype(jnp.uint32))
            bits = (seed.astype(jnp.uint32)
                    + rows * jnp.uint32(0x9E3779B1)
                    + cols * jnp.uint32(0x85EBCA77))
            bits = (bits ^ (bits >> 16)) * jnp.uint32(0x7FEB352D)
            bits = (bits ^ (bits >> 15)) * jnp.uint32(0x846CA68B)
            bits = bits ^ (bits >> 16)
            thresh = jnp.uint32(int(round(p * float(1 << 24))))
            keep = (bits & jnp.uint32(0x00FFFFFF)) >= thresh
            # Keep the 1/(1-p) inverted-dropout rescale for exact module
            # semantics (BN only cancels it up to the eps term).
            h = jnp.where(keep, h * (1.0 / (1.0 - p)), 0.0)

        # BatchNorm1d (training): batch statistics, biased variance.
        # Two-pass centered variance (avoids E[x^2]-E[x]^2 cancellation).
        inv_n = jnp.float32(1.0 / h.shape[0])
        mean = jnp.sum(h, axis=0, keepdims=True) * inv_n
        c = h - mean
        var = jnp.sum(c * c, axis=0, keepdims=True) * inv_n
        inv_std = jax.lax.rsqrt(var + eps)
        o_ref[...] = (c * inv_std * gamma_ref[...]
                      + beta_ref[...]).astype(o_ref.dtype)


def prepare_linear_block_params(w, b, gamma, beta, *, compute_dtype=jnp.bfloat16):
    """One-time parameter prep, hoisted out of the per-call path:
    pad feature dims to multiples of 128, transpose W to (in_pad, out_pad), cast
    to the MXU feed dtype.  Padded output features are inert (bias/beta=0,
    gamma=1) and get sliced off after the kernel."""
    w = jnp.asarray(w, jnp.float32)
    out_f, in_f = w.shape
    in_pad = _round_up(in_f, 128)
    out_pad = _round_up(out_f, 128)
    if in_pad != in_f or out_pad != out_f:
        w = jnp.pad(w, ((0, out_pad - out_f), (0, in_pad - in_f)))
    wt = w.T.astype(compute_dtype)             # (in_pad, out_pad)

    def _row(v, fill):
        v = jnp.asarray(v, jnp.float32).reshape(1, out_f)
        if out_pad != out_f:
            v = jnp.pad(v, ((0, 0), (0, out_pad - out_f)), constant_values=fill)
        return v

    return {
        "wt": wt, "b": _row(b, 0.0), "gamma": _row(gamma, 1.0),
        "beta": _row(beta, 0.0), "in_f": in_f, "out_f": out_f,
        "in_pad": in_pad, "out_pad": out_pad, "compute_dtype": compute_dtype,
    }


def _vmem_cost(N, tn, tk, x_bytes, w_bytes, out_bytes, acc_bytes):
    # Conservative: assume double-buffering on every pipelined operand.
    return (2 * N * tk * x_bytes + 2 * tk * tn * w_bytes
            + 2 * N * tn * out_bytes + N * tn * acc_bytes)


def _select_tiles(N, in_pad, out_pad, x_bytes, w_bytes, out_bytes, acc_bytes,
                  vmem_budget):
    """Pick (tn, tk) under an explicit VMEM budget.

    Preference: tk = in_pad first (x's block index then never changes -> x is
    fetched from HBM exactly once and stays VMEM-resident; arithmetic intensity
    ~N flop/byte, MXU-bound for realistic N), then the largest streamed tk/tn
    that fit.  Feature axis is kept >= 2 tiles when possible (v7x: 2 TCs)."""
    tn_cands = [t for t in (512, 256, 128) if out_pad % t == 0] or [out_pad]
    multi = [t for t in tn_cands if out_pad // t >= 2]
    if multi:
        tn_cands = multi
    tk_cands = [in_pad] + [t for t in (512, 256, 128)
                           if t < in_pad and in_pad % t == 0]

    for tk in tk_cands:
        for tn in tn_cands:
            c = _vmem_cost(N, tn, tk, x_bytes, w_bytes, out_bytes, acc_bytes)
            if c <= vmem_budget:
                return tn, tk, c
    tn, tk = tn_cands[-1], tk_cands[-1]
    return tn, tk, _vmem_cost(N, tn, tk, x_bytes, w_bytes, out_bytes, acc_bytes)


def linear_block(x, params, seed, *, p=0.1, training=True, eps=1e-5,
                 out_dtype=jnp.float32, vmem_budget_bytes=40 << 20,
                 tile_override=None):
    """Fused Linear -> ReLU -> Dropout -> BatchNorm1d (batch statistics).

    x: (N, in_f); params from prepare_linear_block_params.  Returns (N, out_f).
    """
    in_f, out_f = params["in_f"], params["out_f"]
    in_pad, out_pad = params["in_pad"], params["out_pad"]
    cdt = params["compute_dtype"]

    x = jnp.asarray(x)
    N, xf = x.shape
    assert xf == in_f, (xf, in_f)
    if in_pad != in_f:
        # TODO(synk): a ragged last-K tile could be masked in-kernel instead of
        # this wrapper-side pad (one extra HBM pass when in_f % 128 != 0).
        x = jnp.pad(x, ((0, 0), (0, in_pad - in_f)))
    xd = x.astype(cdt)

    use_scratch = jnp.dtype(out_dtype) != jnp.dtype(jnp.float32)
    xb = wb = jnp.dtype(cdt).itemsize
    ob = jnp.dtype(out_dtype).itemsize
    ab = 4 if use_scratch else 0        # f32 accumulator only for non-f32 output

    if tile_override is not None:
        tn, tk = tile_override
        est = _vmem_cost(N, tn, tk, xb, wb, ob, ab)
    else:
        tn, tk, est = _select_tiles(N, in_pad, out_pad, xb, wb, ob, ab,
                                    vmem_budget_bytes)
    # Explicit scoped-VMEM limit with headroom, kept under v7x's 64 MiB per TC.
    vmem_limit = int(min(max(2 * est, 16 << 20), 56 << 20))

    grid = (out_pad // tn, in_pad // tk)
    seed_arr = jnp.asarray([seed], jnp.int32)
    kernel = functools.partial(_linear_block_kernel, p=float(p), eps=float(eps),
                               training=bool(training), tile_n=tn)
    scratch = [pltpu.VMEM((N, tn), jnp.float32)] if use_scratch else []

    out = pl.pallas_call(
        kernel,
        out_shape=jax.ShapeDtypeStruct((N, out_pad), out_dtype),
        grid_spec=pltpu.PrefetchScalarGridSpec(
            num_scalar_prefetch=1,                       # seed lands in SMEM
            grid=grid,                                    # (feature, reduction)
            in_specs=[
                pl.BlockSpec((N, tk), lambda j, k, s: (0, k)),    # x (resident when tk=in_pad)
                pl.BlockSpec((tk, tn), lambda j, k, s: (k, j)),   # W^T  (in_pad, out_pad)
                pl.BlockSpec((1, tn), lambda j, k, s: (0, j)),    # bias
                pl.BlockSpec((1, tn), lambda j, k, s: (0, j)),    # gamma
                pl.BlockSpec((1, tn), lambda j, k, s: (0, j)),    # beta
            ],
            out_specs=pl.BlockSpec((N, tn), lambda j, k, s: (0, j)),
            scratch_shapes=scratch,
        ),
        compiler_params=pltpu.CompilerParams(
            dimension_semantics=("parallel", "arbitrary"),
            vmem_limit_bytes=vmem_limit),
    )(seed_arr, xd, params["wt"], params["b"], params["gamma"], params["beta"])

    return out[:, :out_f]


def _reference(x, w, b, gamma, beta, *, eps=1e-5):
    # Pure-JAX reference (dropout disabled) for correctness checking.
    h = jnp.maximum(x @ w.T + b, 0.0)
    mean = h.mean(axis=0, keepdims=True)
    var = ((h - mean) ** 2).mean(axis=0, keepdims=True)
    return gamma * (h - mean) / jnp.sqrt(var + eps) + beta


if __name__ == "__main__":
    key = jax.random.PRNGKey(0)
    k_x, k_w, k_b, k_g, k_bt = jax.random.split(key, 5)

    # Small shapes that still exercise feature tiling and output padding
    # (out_feats 192 -> padded 256, i.e. 2 feature tiles of 128).
    N, in_feats, out_feats = 16, 256, 192

    x = jax.random.normal(k_x, (N, in_feats), jnp.float32)
    bound = 1.0 / (in_feats ** 0.5)
    w = jax.random.uniform(k_w, (out_feats, in_feats), jnp.float32, -bound, bound)
    b = jax.random.uniform(k_b, (out_feats,), jnp.float32, -bound, bound)
    gamma = 1.0 + 0.1 * jax.random.normal(k_g, (out_feats,), jnp.float32)
    beta = 0.1 * jax.random.normal(k_bt, (out_feats,), jnp.float32)

    # 1) Training mode (dropout on), bf16 MXU feed, auto tiles:
    #    x-resident path (tk = in_pad), grid = (2, 1), accumulate in o_ref.
    params_bf16 = prepare_linear_block_params(w, b, gamma, beta,
                                              compute_dtype=jnp.bfloat16)
    y = jax.block_until_ready(
        linear_block(x, params_bf16, seed=1234, p=0.1, training=True))
    assert y.shape == (N, out_feats) and y.dtype == jnp.float32
    assert bool(jnp.all(jnp.isfinite(y)))
    # BatchNorm guarantees per-feature batch mean == beta (up to fp rounding).
    assert bool(jnp.max(jnp.abs(y.mean(axis=0) - beta)) < 5e-3)

    # 2) Deterministic path (dropout off), f32 end-to-end, forced small tiles so
    #    the streamed-x / multi-step reduction path is exercised (grid = (2, 2)).
    params_f32 = prepare_linear_block_params(w, b, gamma, beta,
                                             compute_dtype=jnp.float32)
    y_det = jax.block_until_ready(
        linear_block(x, params_f32, seed=0, p=0.0, training=False,
                     tile_override=(128, 128)))
    y_ref = _reference(x, w, b, gamma, beta)
    assert jnp.allclose(y_det, y_ref, atol=2e-2, rtol=2e-2), "mismatch vs reference"

    # 3) bf16 output option (separate f32 accumulator scratch path).
    y_bf16 = jax.block_until_ready(
        linear_block(x, params_bf16, seed=7, p=0.1, training=True,
                     out_dtype=jnp.bfloat16))
    assert y_bf16.shape == (N, out_feats) and y_bf16.dtype == jnp.bfloat16
    assert bool(jnp.all(jnp.isfinite(y_bf16.astype(jnp.float32))))

    print("KERNEL_OK")
</pallas_src>

<mosaic_0001>
module attributes {stable_mosaic.version = 11 : i64} {
  func.func @_linear_block_kernel(%arg0: i32, %arg1: i32, %arg2: memref<1xi32, #tpu.memory_space<smem>>, %arg3: memref<16x256xbf16, #tpu.memory_space<vmem>>, %arg4: memref<256x128xbf16, #tpu.memory_space<vmem>>, %arg5: memref<1x128xf32, #tpu.memory_space<vmem>>, %arg6: memref<1x128xf32, #tpu.memory_space<vmem>>, %arg7: memref<1x128xf32, #tpu.memory_space<vmem>>, %arg8: memref<16x128xf32, #tpu.memory_space<vmem>>) attributes {dimension_semantics = [#tpu.dimension_semantics<parallel>, #tpu.dimension_semantics<arbitrary>], iteration_bounds = array<i64: 2, 1>, scalar_prefetch = 1 : i64, scratch_operands = 0 : i64, tpu.core_type = #tpu.core_type<tc>, window_params = [{transform_indices = @transform_0, window_bounds = array<i64: 16, 256>}, {transform_indices = @transform_1, window_bounds = array<i64: 256, 128>}, {transform_indices = @transform_2, window_bounds = array<i64: 1, 128>}, {transform_indices = @transform_3, window_bounds = array<i64: 1, 128>}, {transform_indices = @transform_4, window_bounds = array<i64: 1, 128>}, {transform_indices = @transform_5, window_bounds = array<i64: 16, 128>}]} {
    %c0 = arith.constant 0 : index
    %0 = memref.load %arg2[%c0] : memref<1xi32, #tpu.memory_space<smem>>
    %c0_i32 = arith.constant 0 : i32
    %1 = arith.cmpi eq, %arg1, %c0_i32 : i32
    %2 = arith.extui %1 : i1 to i32
    %c0_i32_0 = arith.constant 0 : i32
    %3 = arith.cmpi ne, %2, %c0_i32_0 : i32
    scf.if %3 {
      %cst_11 = arith.constant 0.000000e+00 : f32
      %13 = vector.broadcast %cst_11 : f32 to vector<16x128xf32>
      %c0_12 = arith.constant 0 : index
      %c0_13 = arith.constant 0 : index
      %14 = vector.load %arg8[%c0_12, %c0_13] : memref<16x128xf32, #tpu.memory_space<vmem>>, vector<16x128xf32>
      tpu.vector_store %arg8[%c0_12, %c0_13], %13 {strides = array<i32>} : memref<16x128xf32, #tpu.memory_space<vmem>>, vector<16x128xf32>,
    } else {
    }
    %c0_1 = arith.constant 0 : index
    %c0_2 = arith.constant 0 : index
    %4 = vector.load %arg8[%c0_1, %c0_2] : memref<16x128xf32, #tpu.memory_space<vmem>>, vector<16x128xf32>
    %c0_3 = arith.constant 0 : index
    %c0_4 = arith.constant 0 : index
    %5 = vector.load %arg3[%c0_3, %c0_4] : memref<16x256xbf16, #tpu.memory_space<vmem>>, vector<16x256xbf16>
    %c0_5 = arith.constant 0 : index
    %c0_6 = arith.constant 0 : index
    %6 = vector.load %arg4[%c0_5, %c0_6] : memref<256x128xbf16, #tpu.memory_space<vmem>>, vector<256x128xbf16>
    %cst = arith.constant dense<0.000000e+00> : vector<16x128xf32>
    %7 = tpu.matmul %5, %6, %cst {dimension_numbers = #tpu.dot_dimension_numbers<[1], [0], [0], [1], [0, 0, 1, 1], [], []>} : vector<16x256xbf16>, vector<256x128xbf16>, vector<16x128xf32> -> vector<16x128xf32>
    %8 = arith.addf %4, %7 : vector<16x128xf32>
    %c0_7 = arith.constant 0 : index
    %c0_8 = arith.constant 0 : index
    %9 = vector.load %arg8[%c0_7, %c0_8] : memref<16x128xf32, #tpu.memory_space<vmem>>, vector<16x128xf32>
    tpu.vector_store %arg8[%c0_7, %c0_8], %8 {strides = array<i32>} : memref<16x128xf32, #tpu.memory_space<vmem>>, vector<16x128xf32>,
    %c0_i32_9 = arith.constant 0 : i32
    %10 = arith.cmpi eq, %arg1, %c0_i32_9 : i32
    %11 = arith.extui %10 : i1 to i32
    %c0_i32_10 = arith.constant 0 : i32
    %12 = arith.cmpi ne, %11, %c0_i32_10 : i32
    scf.if %12 {
      %c0_11 = arith.constant 0 : index
      %c0_12 = arith.constant 0 : index
      %13 = vector.load %arg8[%c0_11, %c0_12] : memref<16x128xf32, #tpu.memory_space<vmem>>, vector<16x128xf32>
      %c0_13 = arith.constant 0 : index
      %c0_14 = arith.constant 0 : index
      %14 = vector.load %arg5[%c0_13, %c0_14] : memref<1x128xf32, #tpu.memory_space<vmem>>, vector<1x128xf32>
      %15 = vector.broadcast %14 : vector<1x128xf32> to vector<16x128xf32>
      %16 = arith.addf %13, %15 : vector<16x128xf32>
      %cst_15 = arith.constant 0.000000e+00 : f32
      %17 = vector.broadcast %cst_15 : f32 to vector<16x128xf32>
      %18 = arith.maximumf %16, %17 : vector<16x128xf32>
      %19 = tpu.iota {dimensions = array<i32: 0>} : vector<16x128xi32>
      %20 = tpu.iota {dimensions = array<i32: 1>} : vector<16x128xi32>
      %c128_i32 = arith.constant 128 : i32
      %21 = arith.muli %arg0, %c128_i32 : i32
      %22 = vector.broadcast %21 : i32 to vector<16x128xi32>
      %23 = arith.addi %20, %22 : vector<16x128xi32>
      %c-1640531535_i32 = arith.constant -1640531535 : i32
      %24 = vector.broadcast %c-1640531535_i32 : i32 to vector<16x128xi32>
      %25 = arith.muli %19, %24 : vector<16x128xi32>
      %26 = vector.broadcast %0 : i32 to vector<16x128xi32>
      %27 = arith.addi %26, %25 : vector<16x128xi32>
      %c-2048144777_i32 = arith.constant -2048144777 : i32
      %28 = vector.broadcast %c-2048144777_i32 : i32 to vector<16x128xi32>
      %29 = arith.muli %23, %28 : vector<16x128xi32>
      %30 = arith.addi %27, %29 : vector<16x128xi32>
      %c16_i32 = arith.constant 16 : i32
      %31 = vector.broadcast %c16_i32 : i32 to vector<16x128xi32>
      %32 = arith.shrui %30, %31 : vector<16x128xi32>
      %33 = arith.xori %30, %32 : vector<16x128xi32>
      %c2146121005_i32 = arith.constant 2146121005 : i32
      %34 = vector.broadcast %c2146121005_i32 : i32 to vector<16x128xi32>
      %35 = arith.muli %33, %34 : vector<16x128xi32>
      %c15_i32 = arith.constant 15 : i32
      %36 = vector.broadcast %c15_i32 : i32 to vector<16x128xi32>
      %37 = arith.shrui %35, %36 : vector<16x128xi32>
      %38 = arith.xori %35, %37 : vector<16x128xi32>
      %c-2073254261_i32 = arith.constant -2073254261 : i32
      %39 = vector.broadcast %c-2073254261_i32 : i32 to vector<16x128xi32>
      %40 = arith.muli %38, %39 : vector<16x128xi32>
      %c16_i32_16 = arith.constant 16 : i32
      %41 = vector.broadcast %c16_i32_16 : i32 to vector<16x128xi32>
      %42 = arith.shrui %40, %41 : vector<16x128xi32>
      %43 = arith.xori %40, %42 : vector<16x128xi32>
      %c16777215_i32 = arith.constant 16777215 : i32
      %44 = vector.broadcast %c16777215_i32 : i32 to vector<16x128xi32>
      %45 = arith.andi %43, %44 : vector<16x128xi32>
      %c1677722_i32 = arith.constant 1677722 : i32
      %46 = vector.broadcast %c1677722_i32 : i32 to vector<16x128xi32>
      %47 = arith.cmpi uge, %45, %46 : vector<16x128xi32>
      %cst_17 = arith.constant 1.11111116 : f32
      %48 = vector.broadcast %cst_17 : f32 to vector<16x128xf32>
      %49 = arith.mulf %18, %48 : vector<16x128xf32>
      %cst_18 = arith.constant 0.000000e+00 : f32
      %50 = vector.broadcast %cst_18 : f32 to vector<16x128xf32>
      %51 = arith.select %47, %49, %50 : vector<16x128xi1>, vector<16x128xf32>
      %cst_19 = arith.constant dense<0.000000e+00> : vector<128xf32>
      %52 = vector.multi_reduction <add>, %51, %cst_19 [0] : vector<16x128xf32> to vector<128xf32>
      %53 = vector.shape_cast %52 : vector<128xf32> to vector<1x128xf32>
      %cst_20 = arith.constant 6.250000e-02 : f32
      %54 = vector.broadcast %cst_20 : f32 to vector<1x128xf32>
      %55 = arith.mulf %53, %54 : vector<1x128xf32>
      %56 = vector.broadcast %55 : vector<1x128xf32> to vector<16x128xf32>
      %57 = arith.subf %51, %56 : vector<16x128xf32>
      %58 = arith.mulf %57, %57 : vector<16x128xf32>
      %cst_21 = arith.constant dense<0.000000e+00> : vector<128xf32>
      %59 = vector.multi_reduction <add>, %58, %cst_21 [0] : vector<16x128xf32> to vector<128xf32>
      %60 = vector.shape_cast %59 : vector<128xf32> to vector<1x128xf32>
      %cst_22 = arith.constant 6.250000e-02 : f32
      %61 = vector.broadcast %cst_22 : f32 to vector<1x128xf32>
      %62 = arith.mulf %60, %61 : vector<1x128xf32>
      %cst_23 = arith.constant 9.99999974E-6 : f32
      %63 = vector.broadcast %cst_23 : f32 to vector<1x128xf32>
      %64 = arith.addf %62, %63 : vector<1x128xf32>
      %65 = math.rsqrt %64 : vector<1x128xf32>
      %66 = vector.broadcast %65 : vector<1x128xf32> to vector<16x128xf32>
      %67 = arith.mulf %57, %66 : vector<16x128xf32>
      %c0_24 = arith.constant 0 : index
      %c0_25 = arith.constant 0 : index
      %68 = vector.load %arg6[%c0_24, %c0_25] : memref<1x128xf32, #tpu.memory_space<vmem>>, vector<1x128xf32>
      %69 = vector.broadcast %68 : vector<1x128xf32> to vector<16x128xf32>
      %70 = arith.mulf %67, %69 : vector<16x128xf32>
      %c0_26 = arith.constant 0 : index
      %c0_27 = arith.constant 0 : index
      %71 = vector.load %arg7[%c0_26, %c0_27] : memref<1x128xf32, #tpu.memory_space<vmem>>, vector<1x128xf32>
      %72 = vector.broadcast %71 : vector<1x128xf32> to vector<16x128xf32>
      %73 = arith.addf %70, %72 : vector<16x128xf32>
      %c0_28 = arith.constant 0 : index
      %c0_29 = arith.constant 0 : index
      %74 = vector.load %arg8[%c0_28, %c0_29] : memref<16x128xf32, #tpu.memory_space<vmem>>, vector<16x128xf32>
      tpu.vector_store %arg8[%c0_28, %c0_29], %73 {strides = array<i32>} : memref<16x128xf32, #tpu.memory_space<vmem>>, vector<16x128xf32>,
    } else {
    }
    return
  }
  func.func @transform_0(%arg0: i32, %arg1: i32, %arg2: memref<1xi32, #tpu.memory_space<smem>>) -> (i32, i32) {
    %c0_i32 = arith.constant 0 : i32
    %c0_i32_0 = arith.constant 0 : i32
    return %c0_i32, %arg1 : i32, i32
  }
  func.func @transform_1(%arg0: i32, %arg1: i32, %arg2: memref<1xi32, #tpu.memory_space<smem>>) -> (i32, i32) {
    %c0_i32 = arith.constant 0 : i32
    return %arg1, %arg0 : i32, i32
  }
  func.func @transform_2(%arg0: i32, %arg1: i32, %arg2: memref<1xi32, #tpu.memory_space<smem>>) -> (i32, i32) {
    %c0_i32 = arith.constant 0 : i32
    %c0_i32_0 = arith.constant 0 : i32
    return %c0_i32, %arg0 : i32, i32
  }
  func.func @transform_3(%arg0: i32, %arg1: i32, %arg2: memref<1xi32, #tpu.memory_space<smem>>) -> (i32, i32) {
    %c0_i32 = arith.constant 0 : i32
    %c0_i32_0 = arith.constant 0 : i32
    return %c0_i32, %arg0 : i32, i32
  }
  func.func @transform_4(%arg0: i32, %arg1: i32, %arg2: memref<1xi32, #tpu.memory_space<smem>>) -> (i32, i32) {
    %c0_i32 = arith.constant 0 : i32
    %c0_i32_0 = arith.constant 0 : i32
    return %c0_i32, %arg0 : i32, i32
  }
  func.func @transform_5(%arg0: i32, %arg1: i32, %arg2: memref<1xi32, #tpu.memory_space<smem>>) -> (i32, i32) {
    %c0_i32 = arith.constant 0 : i32
    %c0_i32_0 = arith.constant 0 : i32
    return %c0_i32, %arg0 : i32, i32
  }
}

</mosaic_0001>

<bundles_post_ra>
// kernel: tpu_custom_call.1
= control target key start
LH: loop header
LB: loop body
LE: loop exit
PB: predicated region body
PF: predicated region fallthrough
CT: control target
= control target key end

     0   :  { %s1406_s0 = inlined_call_operand.<no memory space> [shape: s32[1], index: 0, kind: input, shape index: {}]   ;;  %s1407_s1 = inlined_call_operand.hbm [shape: bf16[16,256], index: 1, kind: input, shape index: {}]   ;;  %s1408_s2 = inlined_call_operand.hbm [shape: bf16[256,256], index: 2, kind: input, shape index: {}]   ;;  %s1409_s3 = inlined_call_operand.vmem [shape: f32[1,256], index: 3, kind: input, shape index: {}]   ;;  %s1410_s4 = inlined_call_operand.vmem [shape: f32[1,256], index: 4, kind: input, shape index: {}]   ;;  %s1411_s5 = inlined_call_operand.hbm [shape: f32[1,256], index: 5, kind: input, shape index: {}]   ;;  %s1412_s6 = inlined_call_operand.hbm [shape: f32[16,256], index: 6, kind: output, shape index: {}]  }
   0x1   :  { %1414 = sst [smem:[#allocation14_spill]] %s1407_s1 }
   0x2   :  { %1415 = sst [smem:[#allocation15_spill]] %s1408_s2 }
   0x3   :  { %11 = sst [smem:[#allocation3]] %s1406_s0 }
   0x4   :  { %12 = vsyncpa [#allocation5], 0 }
   0x5   :  { %13 = vsyncpa [#allocation8], 0 }
   0x6   :  { %15 = vsyncpa [#allocation8 + $0x1], 0 }
   0x7   :  { %16 = vsyncpa [#allocation6], 0 }
   0x8   :  { %18 = vsyncpa [#allocation6 + $0x1], 0  ;;  %s1204_s23 = smov 0   ;;  %s1206_s24 = smov 0  }
   0x9   :  { %s1208_s25 = smov 0   ;;  %s1210_s26 = smov 0  }
   0xa   :  { %s1212_s27 = smov 0   ;;  %s1214_s28 = smov 0  }
   0xb LB: > { %s36_s0 = sadd.s32 1, %s1152_s27  ;;  %s71_s29 = sadd.s32 1, %s1144_s25  ;;  %s1156_s28 = sphi %s1214_s28, %s24_s28   ;;  %s1152_s27 = sphi %s1212_s27, %s1429_s27   ;;  %s1148_s26 = sphi %s1210_s26, %s1428_s26   ;;  %s1144_s25 = sphi %s1208_s25, %s1427_s25   ;;  %s1140_s24 = sphi %s1206_s24, %s1426_s24   ;;  %s1136_s23 = sphi %s1204_s23, %s1425_s23  }
   0xc   : > { %p38_p0 = scmp.ge.s32.totalorder %s36_s0, 2  ;;  %p78_p1 = scmp.ne.s32.totalorder %s1144_s25, %s1140_s24 }
   0xd   : > { %p79_p2 = scmp.eq.s32.totalorder %s1156_s28, 0  ;;  %p785_p4 = scmp.ge.s32.totalorder %s1156_s28, 2 }
   0xe   : > { %s1431_s0 = smov (%p38_p0, %s36_s0), 0  ;;  %p915_p5 = scmp.lt.s32.totalorder %s1156_s28, 2 }
   0xf   : > { %p1244_p3 = por %p79_p2, %p78_p1  ;;  %s67_s7 = ssub.s32 %s1152_s27, %s1431_s0 }
  0x10   : > { %p69_p6 = scmp.eq.s32.totalorder %s67_s7, 0  ;;  %s229_s8 = sand.u32 1, %s1156_s28  }
  0x11   : > { %s231_s9 = sand.u32 1, %s1144_s25   ;;  %s787_s12 = sshll.u32 %s1152_s27, 2 }
  0x12   : > { %s1255_s10 = scalar_select %p69_p6, %s1144_s25, %s71_s29  }
  0x13   : > { %s786_s11 = sshll.u32 %s231_s9, 7  ;;  %s1417_s2 = sld [smem:[#allocation15_spill]] }
  0x14   : > { %s233_s17 = scalar_lea.vmem [#allocation7], %s786_s11  ;;  %p1267_p7 = pnand %p915_p5, %p1244_p3 }
  0x15   : > { %s243_s18 = sshll.u32 %s233_s17, 4  ;;  %s1271_s20 = scalar_lea.sflag [#allocation8], %s229_s8  ;;  %s244_s18 = int_to_ptr.vmem [resolvable:$true] %s243_s18 }
  0x16   : > { %s1413_s21 = smov 128   ;;  %s1159_s22 = smov 64  }
  0x17   : > { %s1160_s29 = smov 4   ;;  %s1278_s7 = sadd.s32 4294967295, %s1156_s28  }
  0x18   : > { %s782_s30 = sadd.s32 4294967294, %s1156_s28   ;;  %p84_p8 = scmp.ne.s32.totalorder %s1140_s24, %s1136_s23 }
  0x19   : > { %s240_s15 = scalar_lea.hbm %s1417_s2, %s787_s12  ;;  %p85_p9 = scmp.eq.s32.totalorder %s1278_s7, 0 }
  0x1a   : > { %s241_s16 = sshll.u32 %s240_s15, 4  ;;  %p186_p10 = scmp.eq.s32.totalorder %s1278_s7, 1  ;;  %s242_s16 = int_to_ptr.hbm [resolvable:$true] %s241_s16 }
  0x1b   : > { %906 = dma.hbm_to_vmem [thread:$0]  (!%p1267_p7), %s242_s16, 2048, %s244_s18, %s1271_s20, %s1413_s21, %s1159_s22, %s1160_s29  }
  0x1c   : > { %p192_p11 = scmp.eq.s32.totalorder %s782_s30, 1  ;;  %p1287_p12 = por %p85_p9, %p84_p8 }
  0x1d   : > { %p783_p13 = scmp.ge.s32.totalorder %s1156_s28, 1  ;;  %p1295_p0 = por %p186_p10, %p78_p1 }
  0x1e   : > { %p1299_p2 = por %p192_p11, %p84_p8  ;;  %p199_p3 = scmp.lt.s32.totalorder %s1156_s28, 3 }
  0x1f   : > { %s1422_s1 = sld [smem:[#allocation14_spill]]  ;;  %s1161_s17 = smov [#allocation4]  }
  0x20   : > { %p1307_p5 = pnand %p783_p13, %p199_p3  ;;  %s215_s18 = sshll.u32 %s1161_s17, 4  ;;  %s216_s18 = int_to_ptr.vmem [resolvable:$true] %s215_s18 }
  0x21   : > { %s271_s30 = scalar_lea.hbm %s1411_s5, %s1152_s27  ;;  %s268_s14 = scalar_lea.vmem [#allocation9], %s231_s9 }
  0x22   : > { %p899_p1 = pneg %p1307_p5  ;;  %s273_s13 = sshll.u32 %s271_s30, 4  ;;  %s274_s13 = int_to_ptr.hbm [resolvable:$true] %s273_s13 }
  0x23   : > { %s275_s21 = sshll.u32 %s268_s14, 4  ;;  %s1424_s2 = smov 128   ;;  %s276_s21 = int_to_ptr.vmem [resolvable:$true] %s275_s21 }
  0x24   : > { %p900_p6 = pnand %p899_p1, %p85_p9  ;;  %284 = sbr.rel (%p1307_p5) target bundleno = 290 (0x122), region = 40 }
  0x25   : > { %s213_s15 = sshll.u32 %s1422_s1, 4  ;;  %s1162_s1 = smov 8   ;;  %s214_s15 = int_to_ptr.hbm [resolvable:$true] %s213_s15 }
  0x26   : > { %902 = dma.hbm_to_vmem [thread:$0]  (!%p900_p6), %s214_s15, 256, %s216_s18, [#allocation5], %s1424_s2, %s1424_s2, %s1162_s1  }
  0x27   : > { %909 = dma.hbm_to_vmem [thread:$0]  (!%p1267_p7), %s274_s13, 16, %s276_s21, %s1271_s20  }
  0x29   : > { %1123 = dma.done.wait (%p85_p9), [#allocation5], 256  }
  0x2a   : > { %1125 = vsyncadd (%p85_p9), [#allocation5], 4294967040  ;;  %s291_s9 = sand.u32 1, %s1278_s7   ;;  %s1334_s17 = sand.u32 1, %s1140_s24  }
  0x2b   : > { %s790_s22 = sshll.u32 %s1334_s17, 7  ;;  %s292_s1 = scalar_lea.sflag [#allocation8], %s291_s9 }
  0x2c   : > { %s295_s2 = scalar_lea.vmem [#allocation7], %s790_s22 }
  0x2d   : > { %1127 = dma.done.wait (%p1287_p12), %s292_s1, 2064  }
  0x2e   : > { %1129 = vsyncadd (%p1287_p12), %s292_s1, 4294965232  ;;  %v880_v0 = vld [vmem:[%s295_s2 + $0x38] sm:$0xff]  ;;  %v879_v2 = vld [vmem:[%s295_s2 + $0x30] sm:$0xff]  ;;  %p344_p7 = scmp.lt.s32.totalorder %s1148_s26, 1  ;;  %s304_s18 = scalar_lea.vmem [#allocation9], %s1334_s17  ;;  %v544_v22 = vlaneseq }
  0x2f   : > { %v888_v1 = vld [vmem:[%s295_s2 + $0x78] sm:$0xff]  ;;  %499 = vmatpush.bf16.msra.mxu0 %v880_v0  ;;  %v887_v3 = vld [vmem:[%s295_s2 + $0x70] sm:$0xff]  ;;  %v878_v4 = vld [vmem:[%s295_s2 + $0x28] sm:$0xff]  ;;  %s350_s29 = sld [smem:[#allocation3]]  ;;  %s864_s30 = sshll.u32 %s1148_s26, 7 }
  0x30   : > { %513 = vmatpush.bf16.msra.mxu1 %v888_v1  ;;  %v886_v5 = vld [vmem:[%s295_s2 + $0x68] sm:$0xff]  ;;  %v877_v6 = vld [vmem:[%s295_s2 + $0x20] sm:$0xff]  ;;  %v876_v8 = vld [vmem:[%s295_s2 + $0x18] sm:$0xff]  ;;  %s1343_s19 = scalar_select %p344_p7, %s1148_s26, 1  ;;  %v545_v23 = vshrl.u32 %v544_v22, 7  ;;  %v548_v25 = vand.u32 127, %v544_v22  ;;  %v550_v26 = vstv %s864_s30 }
  0x31   : > { %v885_v7 = vld [vmem:[%s295_s2 + $0x60] sm:$0xff]  ;;  %v884_v9 = vld [vmem:[%s295_s2 + $0x58] sm:$0xff]  ;;  %v875_v10 = vld [vmem:[%s295_s2 + $0x10] sm:$0xff]  ;;  %s791_s9 = sshll.u32 %s1334_s17, 4  ;;  %s868_s22 = sshll.u32 %s1148_s26, 3 }
  0x32   : > { %v883_v11 = vld [vmem:[%s295_s2 + $0x50] sm:$0xff]  ;;  %v874_v12 = vld [vmem:[%s295_s2 + $0x8] sm:$0xff]  ;;  %v873_v14 = vld [vmem:[%s295_s2] sm:$0xff]  ;;  %s346_s7 = scalar_lea.vmem %s1409_s3, %s1343_s19  ;;  %s349_s16 = scalar_lea.vmem %s1410_s4, %s1343_s19  ;;  %v546_v24 = vadd.s32 8, %v545_v23  ;;  %v551_v27 = vadd.s32 %v550_v26, %v548_v25  ;;  %v552_v28 = vmul.u32 2654435761, %v545_v23 }
  0x33   : > { %500 = vmatpush.bf16.msra.mxu0 %v879_v2  ;;  %v882_v13 = vld [vmem:[%s295_s2 + $0x48] sm:$0xff]  ;;  %v881_v15 = vld [vmem:[%s295_s2 + $0x40] sm:$0xff]  ;;  %v794_v16 = vld [vmem:[#allocation4] sm:$0xf]  ;;  %s341_s8 = scalar_lea.vmem [#allocation10], %s791_s9  ;;  %s636_s19 = scalar_lea.sflag [#allocation6], %s1334_s17 }
  0x34   : > { %514 = vmatpush.bf16.msra.mxu1 %v887_v3  ;;  %v872_v17 = vld [vmem:[#allocation4 + $0x4] sm:$0xf0]  ;;  %v871_v18 = vld [vmem:[#allocation4 + $0x4] sm:$0xf]  ;;  %v796_v19 = vld [vmem:[#allocation4 + $0x8] sm:$0xf0] }
  0x35   : > { %v795_v20 = vor.u32 %v872_v17, %v794_v16  ;;  %v799_v21 = vor.u32 %v871_v18, %v796_v19  ;;  %v553_v29 = vmul.u32 2654435761, %v546_v24  ;;  %v554_v30 = vstv %s350_s29  ;;  %v975_v53 = vld [vmem:[%s346_s7] ss:$0 sm:$0xff]  ;;  %s646_s7 = scalar_lea.hbm %s1412_s6, %s868_s22  ;;  %s647_s26 = sshll.u32 %s341_s8, 4  ;;  %s648_s26 = int_to_ptr.vmem [resolvable:$true] %s647_s26 }
  0x36   : > { %v555_v31 = vadd.s32 %v554_v30, %v552_v28  ;;  %v557_v33 = vmul.u32 2246822519, %v551_v27  ;;  %s649_s15 = sshll.u32 %s646_s7, 4  ;;  %s1090_s13 = scalar_lea.hbm %s1412_s6, 32  ;;  %s650_s15 = int_to_ptr.hbm [resolvable:$true] %s649_s15 }
  0x37   : > { %501 = vmatpush.bf16.msra.mxu0 %v878_v4  ;;  %v556_v32 = vadd.s32 %v554_v30, %v553_v29 }
  0x38   : > { %515 = vmatpush.bf16.msra.mxu1 %v886_v5  ;;  %v558_v34 = vadd.s32 %v557_v33, %v555_v31 }
  0x39   : > { %v559_v35 = vadd.s32 %v557_v33, %v556_v32 }
  0x3a   : > { %v560_v36 = vshrl.u32 %v558_v34, 16 }
  0x3b   : > { %502 = vmatpush.bf16.msra.mxu0 %v877_v6  ;;  %v561_v37 = vshrl.u32 %v559_v35, 16 }
  0x3c   : > { %516 = vmatpush.bf16.msra.mxu1 %v885_v7  ;;  %v562_v38 = vxor.u32 %v560_v36, %v558_v34  ;;  %v976_v34 = vld [vmem:[%s349_s16] ss:$0 sm:$0xff]  ;;  %s1084_s16 = sshra.s32 %s650_s15, 4  ;;  %s1085_s16 = int_to_ptr.hbm [resolvable:$true] %s1084_s16 }
  0x3d   : > { %v563_v39 = vxor.u32 %v561_v37, %v559_v35  ;;  %s1086_s29 = scalar_lea.hbm %s1085_s16, 16  ;;  %p1091_p11 = scmp.lt.s32.totalorder %s1085_s16, %s1412_s6 }
  0x3e   : > { %v564_v40 = vmul.u32 2146121005, %v562_v38  ;;  %v977_v38 = vld [vmem:[%s304_s18] ss:$0 sm:$0xff]  ;;  %p1087_p8 = scmp.ne.s32.totalorder %s1085_s16, %s1086_s29  ;;  %p1092_p12 = scmp.lt.s32.totalorder %s1090_s13, %s1086_s29 }
  0x3f   : > { %503 = vmatpush.bf16.msra.mxu0 %v876_v8  ;;  %v565_v41 = vmul.u32 2146121005, %v563_v39 }
  0x40   : > { %517 = vmatpush.bf16.msra.mxu1 %v884_v9  ;;  %v566_v42 = vshrl.u32 %v564_v40, 15  ;;  %p1088_p9 = pnand %p1087_p8, %p1295_p0  ;;  %p1093_p13 = por %p1092_p12, %p1091_p11 }
  0x41   : > { %v567_v43 = vshrl.u32 %v565_v41, 15 }
  0x42   : > { %v568_v44 = vxor.u32 %v566_v42, %v564_v40  ;;  %p1089_p10 = pneg %p1088_p9 }
  0x43   : > { %504 = vmatpush.bf16.msra.mxu0 %v875_v10  ;;  %v569_v45 = vxor.u32 %v567_v43, %v565_v41 }
  0x44   : > { %518 = vmatpush.bf16.msra.mxu1 %v883_v11  ;;  %v570_v46 = vmul.u32 2221713035, %v568_v44  ;;  %p1094_p3 = pnand %p1093_p13, %p1089_p10 }
  0x45   : > { %v571_v47 = vmul.u32 2221713035, %v569_v45 }
  0x46   : > { %v572_v50 = vshrl.u32 %v570_v46, 16 }
  0x47   : > { %505 = vmatpush.bf16.msra.mxu0 %v874_v12  ;;  %v573_v51 = vshrl.u32 %v571_v47, 16 }
  0x48   : > { %519 = vmatpush.bf16.msra.mxu1 %v882_v13  ;;  %v574_v54 = vxor.u32 %v572_v50, %v570_v46 }
  0x49   : > { %v575_v55 = vxor.u32 %v573_v51, %v571_v47 }
  0x4a   : > { %v576_v59 = vand.u32 16777215, %v574_v54 }
  0x4b   : > { %506 = vmatpush.bf16.msra.mxu0 %v873_v14  ;;  %v577_v60 = vand.u32 16777215, %v575_v55 }
  0x4c   : > { %520 = vmatpush.bf16.msra.mxu1 %v881_v15  ;;  %v865_v63 = vxor.u32 2147483648, %v576_v59 }
  0x4d   : > { %v866_v0 = vxor.u32 2147483648, %v577_v60 }
  0x4e   : > { %507 = vmatmul.bf16.vlgmr.msra.gmra.mxu0 %v795_v20  ;;  %vm580_vm0 = vcmp.ge.s32.totalorder %v865_v63, 2149161370 }
  0x4f   : > { %521 = vmatmul.bf16.vlgmr.msra.gmra.mxu1 %v799_v21  ;;  %vm583_vm1 = vcmp.ge.s32.totalorder %v866_v0, 2149161370 }
  0xcb   : > { %v508_v48 = vpop.f32.mrf.mxu0 }
  0xcc   : > { %v522_v49 = vpop.f32.mrf.mxu1 }
  0xcd   : > { %v523_v52 = vadd.f32 %v522_v49, %v508_v48 }
  0xcf   : > { %v540_v56 = vadd.f32 %v975_v53, %v523_v52 }
  0xd1   : > { %v542_v62 = vmax.f32 %v540_v56, 0.0 }
  0xd3   : > { %v510_v57 = vpop.f32.mrf.mxu0  ;;  %v584_v3 = vmul.f32 1.1111112, %v542_v62 }
  0xd4   : > { %v524_v58 = vpop.f32.mrf.mxu1 }
  0xd5   : > { %v525_v61 = vadd.f32 %v524_v58, %v510_v57  ;;  %v586_v5 = vsel %vm580_vm0, %v584_v3, 0.0 }
  0xd7   : > { %v541_v1 = vadd.f32 %v975_v53, %v525_v61 }
  0xd9   : > { %v543_v2 = vmax.f32 %v541_v1, 0.0 }
  0xdb   : > { %v585_v4 = vmul.f32 1.1111112, %v543_v2 }
  0xdd   : > { %v587_v6 = vsel %vm583_vm1, %v585_v4, 0.0 }
  0xde   : > { %v588_v7 = vadd.f32 %v587_v6, %v586_v5 }
  0xe0   : > { %v589_v8 = vrot.slane %v588_v7, 4 }
  0xe2   : > { %v590_v9 = vadd.f32 %v589_v8, %v588_v7 }
  0xe4   : > { %v591_v10 = vrot.slane %v590_v9, 2 }
  0xe6   : > { %v592_v11 = vadd.f32 %v591_v10, %v590_v9 }
  0xe8   : > { %v593_v12 = vrot.slane %v592_v11, 1 }
  0xea   : > { %v594_v13 = vadd.f32 %v593_v12, %v592_v11 }
  0xec   : > { %v595_v14 = vmul.f32 0.0625, %v594_v13 }
  0xee   : > { %v596_v15 = vsub.f32 %v586_v5, %v595_v14  ;;  %v597_v16 = vsub.f32 %v587_v6, %v595_v14 }
  0xf0   : > { %v598_v17 = vmul.f32 %v596_v15, %v596_v15  ;;  %v599_v18 = vmul.f32 %v597_v16, %v597_v16 }
  0xf2   : > { %v600_v19 = vadd.f32 %v599_v18, %v598_v17 }
  0xf4   : > { %v601_v20 = vrot.slane %v600_v19, 4 }
  0xf6   : > { %v602_v21 = vadd.f32 %v601_v20, %v600_v19 }
  0xf8   : > { %v603_v22 = vrot.slane %v602_v21, 2 }
  0xfa   : > { %v604_v23 = vadd.f32 %v603_v22, %v602_v21 }
  0xfc   : > { %v605_v24 = vrot.slane %v604_v23, 1 }
  0xfe   : > { %v606_v25 = vadd.f32 %v605_v24, %v604_v23 }
 0x100   : > { %v607_v26 = vmul.f32 0.0625, %v606_v25 }
 0x102   : > { %v608_v27 = vadd.f32 1e-05, %v607_v26 }
 0x104   : > { %978 = vrsqrt.f32 %v608_v27  ;;  %vm615_vm3 = vweird.f32 %v608_v27 }
 0x10a   : > { %v979_v28 = vpop.eup %978 }
 0x10b   : > { %v610_v29 = vmul.f32 %v979_v28, %v608_v27  ;;  %vm616_vm2 = vweird.f32 %v979_v28 }
 0x10c   : > { %vm617_vm4 = vmor %vm615_vm3, %vm616_vm2 }
 0x10d   : > { %v611_v30 = vmul.f32 %v979_v28, %v610_v29 }
 0x10f   : > { %v612_v31 = vmul.f32 0.5, %v611_v30 }
 0x111   : > { %v613_v32 = vsub.f32 1.5, %v612_v31 }
 0x113   : > { %v614_v33 = vmul.f32 %v979_v28, %v613_v32 }
 0x115   : > { %v618_v35 = vsel %vm617_vm4, %v979_v28, %v614_v33 }
 0x116   : > { %v619_v36 = vmul.f32 %v618_v35, %v596_v15  ;;  %v620_v37 = vmul.f32 %v618_v35, %v597_v16 }
 0x118   : > { %v625_v39 = vmul.f32 %v976_v34, %v619_v36  ;;  %v626_v40 = vmul.f32 %v976_v34, %v620_v37 }
 0x11a   : > { %v632_v41 = vadd.f32 %v977_v38, %v626_v40  ;;  %v631_v42 = vadd.f32 %v977_v38, %v625_v39 }
 0x11c   : > { %634 = vst [vmem:[%s341_s8 + $0x8] sm:$0xff] %v632_v41 }
 0x11d   : > { %633 = vst [vmem:[%s341_s8] sm:$0xff] %v631_v42 }
 0x11e   : > { %1097 = shalt.err (!%p1094_p3)
}
 0x11f   : > { %s1163_s17 = smov 128   ;;  %s1164_s22 = smov 256  }
 0x120   : > { %s1165_s1 = smov 8  }
 0x121   : > { %897 = dma.vmem_to_hbm [thread:$0]  (%p1295_p0), %s648_s26, 256, %s650_s15, %s636_s19, %s1163_s17, %s1164_s22, %s1165_s1  }
 0x122 PF: > { %s664_s2 = sand.u32 1, %s1136_s23   ;;  %p911_p5 = pnand %p785_p4, %p1299_p2 }
 0x123   : > { %s665_s20 = scalar_lea.sflag [#allocation6], %s664_s2 }
 0x124   : > { %p912_p1 = pneg %p911_p5 }
 0x126   : > { %1131 = dma.done.wait (%p912_p1), %s665_s20, 256  }
 0x127   : > { %1133 = vsyncadd (%p912_p1), %s665_s20, 4294967040  ;;  %s24_s28 = sadd.s32 1, %s1156_s28   ;;  %s1425_s23 = smov %s1140_s24 }
 0x128   : > { %p21_p6 = scmp.ge.s32.totalorder %s24_s28, 4   ;;  %s1426_s24 = smov %s1144_s25 }
 0x129   : > { %s1427_s25 = smov %s1255_s10  ;;  %s1428_s26 = smov %s1152_s27 }
 0x12a   : > { %s1429_s27 = smov %s1431_s0  ;;  %23 = sbr.rel (!%p21_p6) target bundleno = 11 (0xb), region = 116 }
 0x12f   :  { %671 = vsyncpa [#allocation5], 1 }
 0x130   :  { %673 = vsyncpa [#allocation5 + $0x1], 1 }
 0x131   :  { %674 = vsyncpa [#allocation8], 1 }
 0x132   :  { %676 = vsyncpa [#allocation8 + $0x1], 1 }
 0x133   :  { %677 = vsyncpa [#allocation6], 1 }
 0x134   :  { %679 = vsyncpa [#allocation6 + $0x1], 1 }

</bundles_post_ra>
